<compile_context>
chip_gen: v7x
topology: tpu7x:2x2x1
jax: 0.10.0
libtpu: 0.0.40
codegen_flags: <defaults>
</compile_context>

<pallas_src>
import functools

import jax
import jax.numpy as jnp
from jax.experimental import pallas as pl
from jax.experimental.pallas import tpu as pltpu


def _round_up(x, m):
    return ((x + m - 1) // m) * m


def _resident_spec(shape):
    """BlockSpec for a grid-invariant (VMEM-resident) operand.

    Single-buffered (pl.Buffered(1)) — the index_map is constant so no second
    buffer is needed. Falls back to a default spec if this JAX version does
    not accept the kwarg.
    """
    index_map = lambda i: (0, 0)
    try:
        return pl.BlockSpec(shape, index_map, pipeline_mode=pl.Buffered(1))
    except (TypeError, AttributeError):
        return pl.BlockSpec(shape, index_map)


def _vmem_estimate_bytes(tb, f, hp, zp):
    """Rough VMEM footprint used to size the batch tile / vmem limit."""
    weights = (f * hp + hp * 2 * zp) * 2          # bf16, single-buffered
    biases = (hp + 2 * zp) * 4                    # f32
    x_bufs = 2 * tb * f * 4                       # f32 input, double-buffered
    eps_bufs = 2 * tb * zp * 4
    out_bufs = 2 * tb * 3 * zp * 4
    live = tb * (hp * 6 + zp * 24)                # h (f32+bf16), lin/std/mu/z temps
    return weights + biases + x_bufs + eps_bufs + out_bufs + live


def _vmlp_kernel(x_ref, w1_ref, b1_ref, wcat_ref, bcat_ref, eps_ref, out_ref):
    zp = eps_ref.shape[-1]

    # f32 activations cast to bf16 on the VPU (the input stream stays f32 in
    # HBM; no separate wrapper cast pass).
    x = x_ref[...].astype(jnp.bfloat16)

    # hidden = relu(x @ W1 + b1): bf16 MXU matmul, f32 accumulation.
    h = jnp.dot(x, w1_ref[...], preferred_element_type=jnp.float32) + b1_ref[...]
    h = jnp.maximum(h, 0.0).astype(jnp.bfloat16)

    # Fused [logvar | mu] projection: one (TB, Hp) x (Hp, 2*Zp) MXU pass.
    lin = jnp.dot(h, wcat_ref[...], preferred_element_type=jnp.float32) + bcat_ref[...]
    std = jnp.exp(0.5 * lin[:, :zp])   # module semantics: returned "logvar" = exp(0.5*linear)
    mu = lin[:, zp:]
    z = eps_ref[...] * std + mu

    # Three statically-sliced, 128-lane-aligned stores into the lane-dense slab
    # (no concat temporary, unmasked vst).
    out_ref[:, 0:zp] = z
    out_ref[:, zp:2 * zp] = std
    out_ref[:, 2 * zp:3 * zp] = mu


def prepare_params(params):
    """One-time padding / casting / head-fusion of the weights.

    Done once outside the per-call path so the kernel is the only per-step
    reader of weight HBM. Weights stored as [in, out] (y = x @ W + b)."""
    F, H = params["w1"].shape
    Z = params["w_mu"].shape[1]
    Hp = _round_up(H, 128)
    Zp = _round_up(Z, 128)

    def pad2(a, rows, cols):
        return jnp.pad(a, ((0, rows - a.shape[0]), (0, cols - a.shape[1])))

    w1 = pad2(params["w1"], F, Hp).astype(jnp.bfloat16)            # (F, Hp)
    b1 = pad2(params["b1"], 1, Hp).astype(jnp.float32)             # (1, Hp)
    w_cat = jnp.concatenate(
        [pad2(params["w_lv"], Hp, Zp), pad2(params["w_mu"], Hp, Zp)], axis=1
    ).astype(jnp.bfloat16)                                         # (Hp, 2*Zp)
    b_cat = jnp.concatenate(
        [pad2(params["b_lv"], 1, Zp), pad2(params["b_mu"], 1, Zp)], axis=1
    ).astype(jnp.float32)                                          # (1, 2*Zp)
    return {"w1": w1, "b1": b1, "w_cat": w_cat, "b_cat": b_cat}


@functools.partial(jax.jit, static_argnames=("z_dim", "block_b"))
def variational_mlp_forward(x, prepped, epsilon, *, z_dim, block_b=256):
    """x: [B, in_features]; prepped: prepare_params(...) output; epsilon: [B, z_dim].

    Returns (z, logvar, mu) following the module's semantics
    (`logvar` = exp(0.5 * logvar_linear), i.e. the std)."""
    B, F = x.shape
    Hp = prepped["w1"].shape[1]
    Zp = prepped["w_cat"].shape[1] // 2
    Z = z_dim

    # Batch tile: multiple of 16 (bf16 sublane packing), sized against a VMEM
    # budget that also fits v7x's 64 MiB per-core VMEM.
    budget = 48 * 1024 * 1024
    TB = max(16, min(block_b, _round_up(B, 16)))
    while TB > 16 and _vmem_estimate_bytes(TB, F, Hp, Zp) > budget:
        TB = max(16, _round_up(TB // 2, 16))
    Bp = _round_up(B, TB)
    # Prefer >=2 grid steps so the "parallel" batch axis can shard across
    # v7x's two TensorCores (no-op for tiny batches).
    if Bp // TB < 2 and B > 16:
        TB = _round_up(-(-Bp // 2), 16)
        Bp = _round_up(B, TB)
    grid = (Bp // TB,)

    # Only the batch dim is padded (feature dim is a full-extent block).
    x_p = jnp.pad(x.astype(jnp.float32), ((0, Bp - B), (0, 0)))
    eps_p = jnp.pad(epsilon.astype(jnp.float32), ((0, Bp - B), (0, Zp - Z)))

    est = _vmem_estimate_bytes(TB, F, Hp, Zp)
    vmem_limit = int(max(min(est * 3 // 2 + (8 << 20), 56 << 20), 16 << 20))

    weight_bytes = (F * Hp + Hp * 2 * Zp) * 2 + (Hp + 2 * Zp) * 4
    cost = pl.CostEstimate(
        flops=2 * Bp * (F * Hp + Hp * 2 * Zp),
        transcendentals=Bp * Zp,
        bytes_accessed=Bp * F * 4 + weight_bytes + Bp * Zp * 4 + Bp * 3 * Zp * 4,
    )

    out = pl.pallas_call(
        _vmlp_kernel,
        out_shape=jax.ShapeDtypeStruct((Bp, 3 * Zp), jnp.float32),
        grid=grid,
        in_specs=[
            pl.BlockSpec((TB, F), lambda i: (i, 0)),       # x (batch-tiled, f32)
            _resident_spec((F, Hp)),                       # W1 (resident, bf16)
            _resident_spec((1, Hp)),                       # b1 (resident, f32)
            _resident_spec((Hp, 2 * Zp)),                  # [W_lv | W_mu] (resident)
            _resident_spec((1, 2 * Zp)),                   # [b_lv | b_mu] (resident)
            pl.BlockSpec((TB, Zp), lambda i: (i, 0)),      # epsilon (batch-tiled)
        ],
        out_specs=pl.BlockSpec((TB, 3 * Zp), lambda i: (i, 0)),
        compiler_params=pltpu.CompilerParams(
            dimension_semantics=("parallel",),   # batch axis: megacore-shardable
            vmem_limit_bytes=vmem_limit,
        ),
        cost_estimate=cost,
    )(x_p, prepped["w1"], prepped["b1"], prepped["w_cat"], prepped["b_cat"], eps_p)

    # Split the lane-dense slab and strip padding.
    z = out[:B, 0:Z]
    logvar = out[:B, Zp:Zp + Z]
    mu = out[:B, 2 * Zp:2 * Zp + Z]
    return z, logvar, mu


def init_params(key, in_features, hidden_dim, z_dim):
    """Deterministic PyTorch-Linear-style init (uniform in +/- 1/sqrt(fan_in))."""
    ks = jax.random.split(key, 6)

    def uni(k, shape, fan_in):
        bound = 1.0 / jnp.sqrt(fan_in)
        return jax.random.uniform(k, shape, jnp.float32, -bound, bound)

    return {
        "w1":   uni(ks[0], (in_features, hidden_dim), in_features),
        "b1":   uni(ks[1], (1, hidden_dim), in_features),
        "w_lv": uni(ks[2], (hidden_dim, z_dim), hidden_dim),
        "b_lv": uni(ks[3], (1, z_dim), hidden_dim),
        "w_mu": uni(ks[4], (hidden_dim, z_dim), hidden_dim),
        "b_mu": uni(ks[5], (1, z_dim), hidden_dim),
    }


def reference_forward(x, params, epsilon):
    """Pure-JAX reference (activation = ReLU), mirroring the kernel's bf16
    matmul-input precision with f32 accumulation."""
    f32 = lambda a: a.astype(jnp.float32)
    xb = f32(x.astype(jnp.bfloat16))
    w1 = f32(params["w1"].astype(jnp.bfloat16))
    h = jnp.maximum(jnp.dot(xb, w1, precision="highest") + params["b1"], 0.0)
    hb = f32(h.astype(jnp.bfloat16))
    w_lv = f32(params["w_lv"].astype(jnp.bfloat16))
    w_mu = f32(params["w_mu"].astype(jnp.bfloat16))
    logvar = jnp.exp(0.5 * (jnp.dot(hb, w_lv, precision="highest") + params["b_lv"]))
    mu = jnp.dot(hb, w_mu, precision="highest") + params["b_mu"]
    z = epsilon * logvar + mu
    return z, logvar, mu


if __name__ == "__main__":
    key = jax.random.PRNGKey(0)
    k_param, k_x, k_eps = jax.random.split(key, 3)

    batch = 8
    in_features = 32
    hidden_dim = 64
    z_dim = 16

    params = init_params(k_param, in_features, hidden_dim, z_dim)
    prepped = prepare_params(params)   # one-time weight padding / fusion / cast

    x = jax.random.normal(k_x, (batch, in_features), jnp.float32)
    # epsilon = torch.randn_like(logvar): standard normal noise, shape of z.
    # TODO(synk): could be drawn in-kernel (pltpu.prng_seed + stateful_normal)
    # at the cost of bit-parity with this external reference RNG.
    epsilon = jax.random.normal(k_eps, (batch, z_dim), jnp.float32)

    z, logvar, mu = variational_mlp_forward(x, prepped, epsilon, z_dim=z_dim)
    jax.block_until_ready((z, logvar, mu))

    z_ref, logvar_ref, mu_ref = reference_forward(x, params, epsilon)
    assert jnp.allclose(z, z_ref, atol=2e-4, rtol=2e-4), float(jnp.max(jnp.abs(z - z_ref)))
    assert jnp.allclose(logvar, logvar_ref, atol=2e-4, rtol=2e-4)
    assert jnp.allclose(mu, mu_ref, atol=2e-4, rtol=2e-4)

    print("KERNEL_OK")
</pallas_src>

<mosaic_0001>
module attributes {stable_mosaic.version = 11 : i64} {
  func.func @_vmlp_kernel(%arg0: i32, %arg1: memref<16x32xf32, #tpu.memory_space<vmem>>, %arg2: memref<32x128xbf16, #tpu.memory_space<vmem>>, %arg3: memref<1x128xf32, #tpu.memory_space<vmem>>, %arg4: memref<128x256xbf16, #tpu.memory_space<vmem>>, %arg5: memref<1x256xf32, #tpu.memory_space<vmem>>, %arg6: memref<16x128xf32, #tpu.memory_space<vmem>>, %arg7: memref<16x384xf32, #tpu.memory_space<vmem>>) attributes {dimension_semantics = [#tpu.dimension_semantics<parallel>], iteration_bounds = array<i64: 1>, scalar_prefetch = 0 : i64, scratch_operands = 0 : i64, tpu.core_type = #tpu.core_type<tc>, window_params = [{transform_indices = @transform_0, window_bounds = array<i64: 16, 32>}, {pipeline_mode = #tpu.pipeline_mode<synchronous>, transform_indices = @transform_1, window_bounds = array<i64: 32, 128>}, {pipeline_mode = #tpu.pipeline_mode<synchronous>, transform_indices = @transform_2, window_bounds = array<i64: 1, 128>}, {pipeline_mode = #tpu.pipeline_mode<synchronous>, transform_indices = @transform_3, window_bounds = array<i64: 128, 256>}, {pipeline_mode = #tpu.pipeline_mode<synchronous>, transform_indices = @transform_4, window_bounds = array<i64: 1, 256>}, {transform_indices = @transform_5, window_bounds = array<i64: 16, 128>}, {transform_indices = @transform_6, window_bounds = array<i64: 16, 384>}]} {
    %c0 = arith.constant 0 : index
    %c0_0 = arith.constant 0 : index
    %0 = vector.load %arg1[%c0, %c0_0] : memref<16x32xf32, #tpu.memory_space<vmem>>, vector<16x32xf32>
    %1 = arith.truncf %0 : vector<16x32xf32> to vector<16x32xbf16>
    %c0_1 = arith.constant 0 : index
    %c0_2 = arith.constant 0 : index
    %2 = vector.load %arg2[%c0_1, %c0_2] : memref<32x128xbf16, #tpu.memory_space<vmem>>, vector<32x128xbf16>
    %cst = arith.constant dense<0.000000e+00> : vector<16x128xf32>
    %3 = tpu.matmul %1, %2, %cst {dimension_numbers = #tpu.dot_dimension_numbers<[1], [0], [0], [1], [0, 0, 1, 1], [], []>} : vector<16x32xbf16>, vector<32x128xbf16>, vector<16x128xf32> -> vector<16x128xf32>
    %c0_3 = arith.constant 0 : index
    %c0_4 = arith.constant 0 : index
    %4 = vector.load %arg3[%c0_3, %c0_4] : memref<1x128xf32, #tpu.memory_space<vmem>>, vector<1x128xf32>
    %5 = vector.broadcast %4 : vector<1x128xf32> to vector<16x128xf32>
    %6 = arith.addf %3, %5 : vector<16x128xf32>
    %cst_5 = arith.constant 0.000000e+00 : f32
    %7 = vector.broadcast %cst_5 : f32 to vector<16x128xf32>
    %8 = arith.maximumf %6, %7 : vector<16x128xf32>
    %9 = arith.truncf %8 : vector<16x128xf32> to vector<16x128xbf16>
    %c0_6 = arith.constant 0 : index
    %c0_7 = arith.constant 0 : index
    %10 = vector.load %arg4[%c0_6, %c0_7] : memref<128x256xbf16, #tpu.memory_space<vmem>>, vector<128x256xbf16>
    %cst_8 = arith.constant dense<0.000000e+00> : vector<16x256xf32>
    %11 = tpu.matmul %9, %10, %cst_8 {dimension_numbers = #tpu.dot_dimension_numbers<[1], [0], [0], [1], [0, 0, 1, 1], [], []>} : vector<16x128xbf16>, vector<128x256xbf16>, vector<16x256xf32> -> vector<16x256xf32>
    %c0_9 = arith.constant 0 : index
    %c0_10 = arith.constant 0 : index
    %12 = vector.load %arg5[%c0_9, %c0_10] : memref<1x256xf32, #tpu.memory_space<vmem>>, vector<1x256xf32>
    %13 = vector.broadcast %12 : vector<1x256xf32> to vector<16x256xf32>
    %14 = arith.addf %11, %13 : vector<16x256xf32>
    %15 = vector.extract_strided_slice %14 {offsets = [0, 0], sizes = [16, 128], strides = [1, 1]} : vector<16x256xf32> to vector<16x128xf32>
    %cst_11 = arith.constant 5.000000e-01 : f32
    %16 = vector.broadcast %cst_11 : f32 to vector<16x128xf32>
    %17 = arith.mulf %16, %15 : vector<16x128xf32>
    %18 = math.exp %17 : vector<16x128xf32>
    %19 = vector.extract_strided_slice %14 {offsets = [0, 128], sizes = [16, 128], strides = [1, 1]} : vector<16x256xf32> to vector<16x128xf32>
    %c0_12 = arith.constant 0 : index
    %c0_13 = arith.constant 0 : index
    %20 = vector.load %arg6[%c0_12, %c0_13] : memref<16x128xf32, #tpu.memory_space<vmem>>, vector<16x128xf32>
    %21 = arith.mulf %20, %18 : vector<16x128xf32>
    %22 = arith.addf %21, %19 : vector<16x128xf32>
    %c0_14 = arith.constant 0 : index
    %c0_15 = arith.constant 0 : index
    %23 = vector.load %arg7[%c0_14, %c0_15] : memref<16x384xf32, #tpu.memory_space<vmem>>, vector<16x128xf32>
    tpu.vector_store %arg7[%c0_14, %c0_15], %22 {strides = array<i32>} : memref<16x384xf32, #tpu.memory_space<vmem>>, vector<16x128xf32>,
    %c0_16 = arith.constant 0 : index
    %c128 = arith.constant 128 : index
    %24 = vector.load %arg7[%c0_16, %c128] : memref<16x384xf32, #tpu.memory_space<vmem>>, vector<16x128xf32>
    tpu.vector_store %arg7[%c0_16, %c128], %18 {strides = array<i32>} : memref<16x384xf32, #tpu.memory_space<vmem>>, vector<16x128xf32>,
    %c0_17 = arith.constant 0 : index
    %c256 = arith.constant 256 : index
    %25 = vector.load %arg7[%c0_17, %c256] : memref<16x384xf32, #tpu.memory_space<vmem>>, vector<16x128xf32>
    tpu.vector_store %arg7[%c0_17, %c256], %19 {strides = array<i32>} : memref<16x384xf32, #tpu.memory_space<vmem>>, vector<16x128xf32>,
    return
  }
  func.func @transform_0(%arg0: i32) -> (i32, i32) {
    %c0_i32 = arith.constant 0 : i32
    %c0_i32_0 = arith.constant 0 : i32
    return %arg0, %c0_i32 : i32, i32
  }
  func.func @transform_1(%arg0: i32) -> (i32, i32) {
    %c0_i32 = arith.constant 0 : i32
    %c0_i32_0 = arith.constant 0 : i32
    %c0_i32_1 = arith.constant 0 : i32
    return %c0_i32, %c0_i32_0 : i32, i32
  }
  func.func @transform_2(%arg0: i32) -> (i32, i32) {
    %c0_i32 = arith.constant 0 : i32
    %c0_i32_0 = arith.constant 0 : i32
    %c0_i32_1 = arith.constant 0 : i32
    return %c0_i32, %c0_i32_0 : i32, i32
  }
  func.func @transform_3(%arg0: i32) -> (i32, i32) {
    %c0_i32 = arith.constant 0 : i32
    %c0_i32_0 = arith.constant 0 : i32
    %c0_i32_1 = arith.constant 0 : i32
    return %c0_i32, %c0_i32_0 : i32, i32
  }
  func.func @transform_4(%arg0: i32) -> (i32, i32) {
    %c0_i32 = arith.constant 0 : i32
    %c0_i32_0 = arith.constant 0 : i32
    %c0_i32_1 = arith.constant 0 : i32
    return %c0_i32, %c0_i32_0 : i32, i32
  }
  func.func @transform_5(%arg0: i32) -> (i32, i32) {
    %c0_i32 = arith.constant 0 : i32
    %c0_i32_0 = arith.constant 0 : i32
    return %arg0, %c0_i32 : i32, i32
  }
  func.func @transform_6(%arg0: i32) -> (i32, i32) {
    %c0_i32 = arith.constant 0 : i32
    %c0_i32_0 = arith.constant 0 : i32
    return %arg0, %c0_i32 : i32, i32
  }
}

</mosaic_0001>

<bundles_post_ra>
// kernel: variational_mlp_forward.1
= control target key start
LH: loop header
LB: loop body
LE: loop exit
PB: predicated region body
PF: predicated region fallthrough
CT: control target
= control target key end

     0   :  { %11 = vsyncpa [#allocation3], 0  ;;  %s377_s21 = smov [#allocation2]   ;;  %s472_s0 = inlined_call_operand.vmem [shape: f32[16,32], index: 0, kind: input, shape index: {}]   ;;  %s473_s1 = inlined_call_operand.vmem [shape: bf16[32,128], index: 1, kind: input, shape index: {}]   ;;  %s474_s2 = inlined_call_operand.vmem [shape: f32[1,128], index: 2, kind: input, shape index: {}]   ;;  %s475_s3 = inlined_call_operand.hbm [shape: bf16[128,256], index: 3, kind: input, shape index: {}]   ;;  %s476_s4 = inlined_call_operand.vmem [shape: f32[1,256], index: 4, kind: input, shape index: {}]   ;;  %s477_s5 = inlined_call_operand.vmem [shape: f32[16,128], index: 5, kind: input, shape index: {}]   ;;  %s478_s6 = inlined_call_operand.vmem [shape: f32[16,384], index: 6, kind: output, shape index: {}]  }
   0x1   :  { %s23_s22 = sshll.u32 %s377_s21, 4  ;;  %s353_s25 = scalar_lea.hbm %s475_s3, 2048  ;;  %s24_s22 = int_to_ptr.vmem [resolvable:$true] %s23_s22 }
   0x2   :  { %p354_p0 = scmp.ne.s32.totalorder %s475_s3, %s353_s25  ;;  %p357_p1 = scmp.lt.u32.totalorder %s353_s25, %s475_s3 }
   0x4   :  { %p359_p2 = pnand %p357_p1, %p354_p0 }
   0x6   :  { %362 = shalt.err (!%p359_p2)
}
   0x7   :  { %s363_s30 = scalar_lea.vmem %s24_s22, 2048  ;;  %p368_p4 = scmp.lt.s32.totalorder %s24_s22, %s24_s22 }
   0x8   :  { %p364_p3 = scmp.ne.s32.totalorder %s24_s22, %s363_s30  ;;  %p369_p5 = scmp.lt.s32.totalorder %s363_s30, %s363_s30 }
   0xa   :  { %p370_p6 = por %p369_p5, %p368_p4 }
   0xc   :  { %p371_p7 = pnand %p370_p6, %p364_p3 }
   0xe   :  { %374 = shalt.err (!%p371_p7)
}
   0xf   :  { %s378_s7 = smov 128   ;;  %s379_s8 = smov 8  }
  0x10   :  { %29 = dma.hbm_to_vmem [thread:$0]  %s475_s3, 2048, %s24_s22, [#allocation3], %s378_s7, %s378_s7, %s379_s8  }
  0x11   :  { %375 = dma.done.wait [#allocation3], 2048  }
  0x12   :  { %376 = vsyncadd [#allocation3], 4294965248  ;;  %v380_v0 = vmov 0.0   ;;  %vm381_vm0 = vmmov 0   ;;  %v323_v1 = vld [vmem:[%s473_s1] sm:$0xff]   ;;  %v324_v2 = vld [vmem:[%s473_s1 + $0x8] sm:$0xff]   ;;  %v130_v33 = vlaneseq }
  0x13   :  { %309 = vmatprep.subr.bf16.mxu0 %v380_v0  ;;  %313 = vmatprep.mubr.msk.bf16.mxu0 %vm381_vm0, %v380_v0  ;;  %v38_v3 = vld [vmem:[%s472_s0] sm:$0xff]  ;;  %v39_v4 = vld [vmem:[%s472_s0 + $0x8] sm:$0xff]  ;;  %v328_v7 = vld [vmem:[#allocation2 + $0x14] ss:$8 sps:$4 sm:$0xff]   ;;  %vm64_vm1 = vcmask 261120   ;;  %v382_v22 = vmov 0  }
  0x14   :  { %310 = vmatpush3.bf16.msra.mxu0 %v323_v1  ;;  %v325_v5 = vld [vmem:[#allocation2 + $0x4] ss:$8 sps:$4 sm:$0xff]   ;;  %v327_v6 = vld [vmem:[#allocation2] ss:$8 sps:$4 sm:$0xff]   ;;  %v40_v8 = vpack.c.bf16 %v39_v4, %v38_v3  ;;  %v330_v9 = vld [vmem:[#allocation2 + $0x10] ss:$8 sps:$4 sm:$0xff]   ;;  %252 = vmatprep.mubr.bf16.mxu1 %v382_v22 }
  0x15   :  { %311 = vmatprep.subr.bf16.mxu0 %v380_v0  ;;  %220 = vmatprep.subr.bf16.mxu1 %v325_v5  ;;  %v331_v10 = vld [vmem:[#allocation2 + $0x24] ss:$8 sps:$4 sm:$0xff]   ;;  %v333_v11 = vld [vmem:[#allocation2 + $0x20] ss:$8 sps:$4 sm:$0xff]   ;;  %v334_v12 = vld [vmem:[#allocation2 + $0x34] ss:$8 sps:$4 sm:$0xff]  }
  0x16   :  { %221 = vmatpush1.bf16.msra.mxu1 %v327_v6  ;;  %v336_v13 = vld [vmem:[#allocation2 + $0x30] ss:$8 sps:$4 sm:$0xff]   ;;  %v337_v14 = vld [vmem:[#allocation2 + $0x44] ss:$8 sps:$4 sm:$0xff]   ;;  %v339_v15 = vld [vmem:[#allocation2 + $0x40] ss:$8 sps:$4 sm:$0xff]  }
  0x17   :  { %222 = vmatprep.subr.bf16.mxu1 %v328_v7  ;;  %v340_v16 = vld [vmem:[#allocation2 + $0x54] ss:$8 sps:$4 sm:$0xff]   ;;  %v342_v17 = vld [vmem:[#allocation2 + $0x50] ss:$8 sps:$4 sm:$0xff]   ;;  %v343_v18 = vld [vmem:[#allocation2 + $0x64] ss:$8 sps:$4 sm:$0xff]  }
  0x18   :  { %312 = vmatpush3.bf16.msra.mxu0 %v324_v2  ;;  %v345_v19 = vld [vmem:[#allocation2 + $0x60] ss:$8 sps:$4 sm:$0xff]   ;;  %v346_v20 = vld [vmem:[#allocation2 + $0x74] ss:$8 sps:$4 sm:$0xff]   ;;  %v348_v21 = vld [vmem:[#allocation2 + $0x70] ss:$8 sps:$4 sm:$0xff]  }
  0x19   :  { %v286_v23 = vld [vmem:[%s474_s2] ss:$0 sm:$0xff]  ;;  %v131_v34 = vshrl.u32 %v130_v33, 7  ;;  %v270_v54 = vld [vmem:[%s477_s5 + $0x8] sm:$0xff] }
  0x1a   :  { %223 = vmatpush1.bf16.msra.mxu1 %v330_v9  ;;  %v128_v36 = vld [vmem:[%s476_s4] sm:$0x3] }
  0x1b   :  { %314 = vmatmul.mubr.msk.bf16.vlgmr.msra.gmra.mrb[0].mxu0 %vm64_vm1, %v40_v8  ;;  %224 = vmatprep.subr.bf16.mxu1 %v331_v10  ;;  %v132_v35 = vsub.s32 0, %v131_v34  ;;  %v136_v37 = vsub.s32 1, %v131_v34  ;;  %v269_v52 = vld [vmem:[%s477_s5] sm:$0xff] }
  0x1d   :  { %v133_v38 = vrot.slane %v128_v36, %v132_v35  ;;  %v137_v39 = vrot.slane %v128_v36, %v136_v37 }
  0x1e   :  { %225 = vmatpush1.bf16.msra.mxu1 %v333_v11 }
  0x1f   :  { %226 = vmatprep.subr.bf16.mxu1 %v334_v12 }
  0x22   :  { %227 = vmatpush1.bf16.msra.mxu1 %v336_v13 }
  0x23   :  { %228 = vmatprep.subr.bf16.mxu1 %v337_v14 }
  0x26   :  { %229 = vmatpush1.bf16.msra.mxu1 %v339_v15 }
  0x27   :  { %230 = vmatprep.subr.bf16.mxu1 %v340_v16 }
  0x2a   :  { %231 = vmatpush1.bf16.msra.mxu1 %v342_v17 }
  0x2b   :  { %232 = vmatprep.subr.bf16.mxu1 %v343_v18 }
  0x2e   :  { %233 = vmatpush1.bf16.msra.mxu1 %v345_v19 }
  0x2f   :  { %234 = vmatprep.subr.bf16.mxu1 %v346_v20 }
  0x32   :  { %235 = vmatpush1.bf16.msra.mxu1 %v348_v21 }
  0xee   :  { %v102_v24 = vpop.f32.mrb[0].mxu0 }
  0xef   :  { %v103_v25 = vadd.f32 %v286_v23, %v102_v24  ;;  %v315_v26 = vpop.f32.mrb[1].mxu0 }
  0xf0   :  { %v105_v27 = vpop.f32.mrb[2].mxu0 }
  0xf1   :  { %v106_v28 = vadd.f32 %v286_v23, %v105_v27  ;;  %v316_v29 = vpop.f32.mrb[3].mxu0  ;;  %v109_v30 = vmax.f32 %v103_v25, 0.0 }
  0xf3   :  { %v110_v31 = vmax.f32 %v106_v28, 0.0 }
  0xf5   :  { %v111_v32 = vpack.c.bf16 %v110_v31, %v109_v30 }
  0xf7   :  { %253 = vmatmul.mubr.bf16.vlgmr.msra.gmra.mrb[0].mxu1 %v111_v32 }
 0x1ca   :  { %v254_v40 = vpop.f32.mrb[0].mxu1 }
 0x1cb   :  { %v255_v41 = vadd.f32 %v254_v40, %v133_v38  ;;  %v256_v42 = vpop.f32.mrb[1].mxu1 }
 0x1cc   :  { %v257_v43 = vadd.f32 %v256_v42, %v137_v39  ;;  %v258_v44 = vpop.f32.mrb[2].mxu1 }
 0x1cd   :  { %v263_v45 = vmul.f32 0.5, %v255_v41  ;;  %v259_v46 = vadd.f32 %v258_v44, %v133_v38  ;;  %v260_v47 = vpop.f32.mrb[3].mxu1 }
 0x1ce   :  { %279 = vst [vmem:[%s478_s6 + $0x10] sm:$0xff] %v257_v43  ;;  %v261_v48 = vadd.f32 %v260_v47, %v137_v39 }
 0x1cf   :  { %v265_v49 = vmul.f32 1.442695, %v263_v45  ;;  %v264_v50 = vmul.f32 0.5, %v259_v46 }
 0x1d0   :  { %280 = vst [vmem:[%s478_s6 + $0x28] sm:$0xff] %v261_v48 }
 0x1d1   :  { %349 = vpow2.f32 %v265_v49  ;;  %v267_v51 = vmul.f32 1.442695, %v264_v50 }
 0x1d3   :  { %351 = vpow2.f32 %v267_v51 }
 0x1db   :  { %v350_v53 = vpop.eup %349 }
 0x1dc   :  { %277 = vst [vmem:[%s478_s6 + $0x8] sm:$0xff] %v350_v53  ;;  %v271_v55 = vmul.f32 %v350_v53, %v269_v52 }
 0x1dd   :  { %v352_v56 = vpop.eup %351 }
 0x1de   :  { %v273_v57 = vadd.f32 %v271_v55, %v257_v43  ;;  %278 = vst [vmem:[%s478_s6 + $0x20] sm:$0xff] %v352_v56  ;;  %v272_v58 = vmul.f32 %v352_v56, %v270_v54 }
 0x1e0   :  { %275 = vst [vmem:[%s478_s6] sm:$0xff] %v273_v57  ;;  %v274_v59 = vadd.f32 %v272_v58, %v261_v48 }
 0x1e2   :  { %276 = vst [vmem:[%s478_s6 + $0x18] sm:$0xff] %v274_v59 }
 0x1e3   :  { %285 = vsyncpa [#allocation3], 1 }

</bundles_post_ra>
